<compile_context>
chip_gen: v7x
topology: tpu7x:2x2x1
jax: 0.10.0
libtpu: 0.0.40
codegen_flags: <defaults>
</compile_context>

<pallas_src>
import functools

import jax
import jax.numpy as jnp
import numpy as np
from jax.experimental import pallas as pl
from jax.experimental.pallas import tpu as pltpu


def _round_up(x, m):
    return ((x + m - 1) // m) * m


def _smooth_ce_kernel(preds_ref, tgt_ref, out_ref,
                      acc_neg, acc_nll, acc_cnt, *,
                      pad, n_rows, tm, needs_guard, needs_rowmask):
    c = pl.program_id(0)            # core-split axis ("parallel")
    i = pl.program_id(1)            # row-tile axis ("arbitrary")
    n_i = pl.num_programs(1)

    @pl.when(i == 0)
    def _():
        acc_neg[...] = jnp.zeros_like(acc_neg)
        acc_nll[...] = jnp.zeros_like(acc_nll)
        acc_cnt[...] = jnp.zeros_like(acc_cnt)

    # Logical tile index (may point one past the last real tile -> fully padded;
    # the BlockSpec index_map clamps the DMA to the last real block).
    tile = c * n_i + i
    row0 = tile * tm

    def compute():
        x = preds_ref[...].astype(jnp.float32)                  # (tm, n)
        n = x.shape[-1]

        # stable per-row log-sum-exp
        m = jnp.max(x, axis=-1, keepdims=True)                  # (tm, 1)
        lse = m + jnp.log(jnp.sum(jnp.exp(x - m), axis=-1, keepdims=True))

        # smoothing term: -sum_c log_softmax(x)_c = n*lse - sum_c x_c
        rowsum = jnp.sum(x, axis=-1, keepdims=True)              # (tm, 1)
        neg_row = n * lse - rowsum                               # (tm, 1)

        # NLL term: -log_softmax(x)[r, target[r]] for target != pad
        tgt = tgt_ref[...]                                       # (tm, 1) int32
        col = jax.lax.broadcasted_iota(jnp.int32, x.shape, 1)    # (tm, n)
        picked = jnp.sum(jnp.where(col == tgt, x, 0.0), axis=-1, keepdims=True)
        nll_row = lse - picked                                   # (tm, 1)

        valid = tgt != pad                                       # (tm, 1) bool
        if needs_rowmask:
            rows = row0 + jax.lax.broadcasted_iota(jnp.int32, (tm, 1), 0)
            rmask = rows < n_rows
            # select (not multiply) so garbage / NaN in padded rows never leaks
            neg_row = jnp.where(rmask, neg_row, 0.0)
            valid = jnp.logical_and(valid, rmask)

        # cheap per-row VPU accumulation; scalar reduction deferred to last step
        acc_neg[...] += neg_row
        acc_nll[...] += jnp.where(valid, nll_row, 0.0)
        acc_cnt[...] += valid.astype(jnp.float32)

    if needs_guard:
        pl.when(row0 < n_rows)(compute)      # skip duplicated / fully-padded tail tile
    else:
        compute()

    @pl.when(i == n_i - 1)
    def _():
        s_neg = jnp.sum(acc_neg[...])
        s_nll = jnp.sum(acc_nll[...])
        s_cnt = jnp.sum(acc_cnt[...])
        rid = jax.lax.broadcasted_iota(jnp.int32, (8, 128), 0)
        slab = jnp.where(rid == 0, s_neg,
               jnp.where(rid == 1, s_nll,
               jnp.where(rid == 2, s_cnt, 0.0)))
        out_ref[...] = slab[None].astype(jnp.float32)            # (1, 8, 128)


def smooth_cross_entropy_loss(preds, target, *, epsilon=0.01,
                              reduction="mean", pad=0, tm=None):
    """Pallas-TPU forward of SmoothCrossEntropyLoss."""
    n = preds.shape[-1]
    preds2 = preds.reshape(-1, n)                    # native dtype (bf16 stays bf16)
    tgt2 = target.reshape(-1, 1).astype(jnp.int32)
    N = preds2.shape[0]
    itemsize = jnp.dtype(preds2.dtype).itemsize

    # Row tile: largest multiple of 16 whose double-buffered logits tile fits the
    # VMEM budget (safe on v5e/v6e/v7x), capped at 1024 and at the row count.
    preds_budget = 24 * 1024 * 1024                  # bytes for 2x (tm, n) buffers
    if tm is None:
        tm_cap = max(16, preds_budget // (2 * n * itemsize))
        tm = min(tm_cap, 1024, _round_up(N, 16))
        tm = max(16, (tm // 16) * 16)

    R = pl.cdiv(N, tm)          # total row tiles
    Rc = pl.cdiv(R, 2)          # row tiles per core-split half
    grid = (2, Rc)

    needs_rowmask = (N % tm) != 0                    # last real tile partially filled
    needs_guard = (2 * Rc - 1) * tm >= N             # some grid tile is fully padded

    def idx_map(c, i):
        return (jnp.minimum(c * Rc + i, R - 1), 0)   # clamp duplicate tail tile

    cost = pl.CostEstimate(
        flops=int(6 * N * n),
        transcendentals=int(N * n),
        bytes_accessed=int(N * n * itemsize + N * 4 + 2 * 8 * 128 * 4),
    )

    partials = pl.pallas_call(
        functools.partial(_smooth_ce_kernel, pad=pad, n_rows=N, tm=tm,
                          needs_guard=needs_guard, needs_rowmask=needs_rowmask),
        out_shape=jax.ShapeDtypeStruct((2, 8, 128), jnp.float32),
        grid_spec=pltpu.PrefetchScalarGridSpec(
            num_scalar_prefetch=0,
            grid=grid,
            in_specs=[
                pl.BlockSpec((tm, n), idx_map),      # logits tile (native dtype)
                pl.BlockSpec((tm, 1), idx_map),      # targets tile
            ],
            out_specs=pl.BlockSpec((1, 8, 128), lambda c, i: (c, 0, 0)),
            scratch_shapes=[
                pltpu.VMEM((tm, 1), jnp.float32),    # acc: smoothing term
                pltpu.VMEM((tm, 1), jnp.float32),    # acc: nll
                pltpu.VMEM((tm, 1), jnp.float32),    # acc: valid count
            ],
        ),
        compiler_params=pltpu.CompilerParams(
            dimension_semantics=("parallel", "arbitrary"),
            vmem_limit_bytes=40 * 1024 * 1024),
        cost_estimate=cost,
    )(preds2, tgt2)

    # combine the two per-core partials
    sums = jnp.sum(partials[:, :3, 0], axis=0)       # (3,)
    sum_neg, sum_nll, cnt = sums[0], sums[1], sums[2]

    if reduction == "mean":
        loss = sum_neg / N
        nll = sum_nll / cnt      # matches PyTorch (NaN if every target is ignored)
    elif reduction == "sum":
        loss = sum_neg
        nll = sum_nll
    else:
        raise NotImplementedError("reduction must be 'mean' or 'sum'")

    return epsilon * (loss / n) + (1.0 - epsilon) * nll


def _reference(preds, target, epsilon=0.01, pad=0):
    n = preds.shape[-1]
    x = preds.reshape(-1, n).astype(jnp.float32)
    t = target.reshape(-1).astype(jnp.int32)
    log_p = jax.nn.log_softmax(x, axis=-1)
    loss = jnp.mean(-jnp.sum(log_p, axis=-1))
    valid = t != pad
    picked = jnp.take_along_axis(log_p, t[:, None], axis=-1)[:, 0]
    nll = jnp.sum(jnp.where(valid, -picked, 0.0)) / jnp.sum(valid)
    return epsilon * (loss / n) + (1.0 - epsilon) * nll


if __name__ == "__main__":
    key = jax.random.PRNGKey(0)
    k1, k2 = jax.random.split(key)

    B, S, n = 2, 8, 32                              # preds: (batch, seq, vocab)
    preds = jax.random.normal(k1, (B, S, n), dtype=jnp.float32)
    target = jax.random.randint(k2, (B, S), 0, n)   # includes some 0s (pad) by chance
    target = target.at[0, 0].set(0)                 # guarantee at least one ignored token

    out = smooth_cross_entropy_loss(preds, target, epsilon=0.01,
                                    reduction="mean", pad=0)
    out = jax.block_until_ready(out)

    ref = _reference(preds, target, epsilon=0.01, pad=0)
    np.testing.assert_allclose(np.asarray(out), np.asarray(ref), rtol=1e-5, atol=1e-5)

    print("KERNEL_OK")
</pallas_src>

<mosaic_0001>
module attributes {stable_mosaic.version = 11 : i64} {
  func.func @_smooth_ce_kernel(%arg0: i32, %arg1: i32, %arg2: memref<16x32xf32, #tpu.memory_space<vmem>>, %arg3: memref<16x1xi32, #tpu.memory_space<vmem>>, %arg4: memref<1x8x128xf32, #tpu.memory_space<vmem>>, %arg5: memref<16x1xf32, #tpu.memory_space<vmem>>, %arg6: memref<16x1xf32, #tpu.memory_space<vmem>>, %arg7: memref<16x1xf32, #tpu.memory_space<vmem>>) attributes {dimension_semantics = [#tpu.dimension_semantics<parallel>, #tpu.dimension_semantics<arbitrary>], iteration_bounds = array<i64: 2, 1>, scalar_prefetch = 0 : i64, scratch_operands = 3 : i64, tpu.core_type = #tpu.core_type<tc>, window_params = [{transform_indices = @transform_0, window_bounds = array<i64: 16, 32>}, {transform_indices = @transform_1, window_bounds = array<i64: 16, 1>}, {transform_indices = @transform_2, window_bounds = array<i64: 1, 8, 128>}]} {
    %c0_i32 = arith.constant 0 : i32
    %0 = arith.cmpi eq, %arg1, %c0_i32 : i32
    %1 = arith.extui %0 : i1 to i32
    %c0_i32_0 = arith.constant 0 : i32
    %2 = arith.cmpi ne, %1, %c0_i32_0 : i32
    scf.if %2 {
      %cst = arith.constant 0.000000e+00 : f32
      %12 = vector.broadcast %cst : f32 to vector<16x1xf32>
      %c0 = arith.constant 0 : index
      %c0_5 = arith.constant 0 : index
      %13 = vector.load %arg5[%c0, %c0_5] : memref<16x1xf32, #tpu.memory_space<vmem>>, vector<16x1xf32>
      tpu.vector_store %arg5[%c0, %c0_5], %12 {strides = array<i32>} : memref<16x1xf32, #tpu.memory_space<vmem>>, vector<16x1xf32>,
      %cst_6 = arith.constant 0.000000e+00 : f32
      %14 = vector.broadcast %cst_6 : f32 to vector<16x1xf32>
      %c0_7 = arith.constant 0 : index
      %c0_8 = arith.constant 0 : index
      %15 = vector.load %arg6[%c0_7, %c0_8] : memref<16x1xf32, #tpu.memory_space<vmem>>, vector<16x1xf32>
      tpu.vector_store %arg6[%c0_7, %c0_8], %14 {strides = array<i32>} : memref<16x1xf32, #tpu.memory_space<vmem>>, vector<16x1xf32>,
      %cst_9 = arith.constant 0.000000e+00 : f32
      %16 = vector.broadcast %cst_9 : f32 to vector<16x1xf32>
      %c0_10 = arith.constant 0 : index
      %c0_11 = arith.constant 0 : index
      %17 = vector.load %arg7[%c0_10, %c0_11] : memref<16x1xf32, #tpu.memory_space<vmem>>, vector<16x1xf32>
      tpu.vector_store %arg7[%c0_10, %c0_11], %16 {strides = array<i32>} : memref<16x1xf32, #tpu.memory_space<vmem>>, vector<16x1xf32>,
    } else {
    }
    %c1_i32 = arith.constant 1 : i32
    %3 = arith.muli %arg0, %c1_i32 : i32
    %4 = arith.addi %3, %arg1 : i32
    %c16_i32 = arith.constant 16 : i32
    %5 = arith.muli %4, %c16_i32 : i32
    %c16_i32_1 = arith.constant 16 : i32
    %6 = arith.cmpi slt, %5, %c16_i32_1 : i32
    %7 = arith.extui %6 : i1 to i32
    %c0_i32_2 = arith.constant 0 : i32
    %8 = arith.cmpi ne, %7, %c0_i32_2 : i32
    scf.if %8 {
      %c0 = arith.constant 0 : index
      %c0_5 = arith.constant 0 : index
      %12 = vector.load %arg2[%c0, %c0_5] : memref<16x32xf32, #tpu.memory_space<vmem>>, vector<16x32xf32>
      %cst = arith.constant dense<0xFF800000> : vector<16xf32>
      %13 = vector.multi_reduction <maximumf>, %12, %cst [1] : vector<16x32xf32> to vector<16xf32>
      %14 = vector.shape_cast %13 : vector<16xf32> to vector<16x1xf32>
      %15 = vector.broadcast %14 : vector<16x1xf32> to vector<16x32xf32>
      %16 = arith.subf %12, %15 : vector<16x32xf32>
      %17 = math.exp %16 : vector<16x32xf32>
      %cst_6 = arith.constant dense<0.000000e+00> : vector<16xf32>
      %18 = vector.multi_reduction <add>, %17, %cst_6 [1] : vector<16x32xf32> to vector<16xf32>
      %19 = vector.shape_cast %18 : vector<16xf32> to vector<16x1xf32>
      %20 = math.log %19 : vector<16x1xf32>
      %21 = arith.addf %14, %20 : vector<16x1xf32>
      %cst_7 = arith.constant dense<0.000000e+00> : vector<16xf32>
      %22 = vector.multi_reduction <add>, %12, %cst_7 [1] : vector<16x32xf32> to vector<16xf32>
      %23 = vector.shape_cast %22 : vector<16xf32> to vector<16x1xf32>
      %cst_8 = arith.constant 3.200000e+01 : f32
      %24 = vector.broadcast %cst_8 : f32 to vector<16x1xf32>
      %25 = arith.mulf %24, %21 : vector<16x1xf32>
      %26 = arith.subf %25, %23 : vector<16x1xf32>
      %c0_9 = arith.constant 0 : index
      %c0_10 = arith.constant 0 : index
      %27 = vector.load %arg3[%c0_9, %c0_10] : memref<16x1xi32, #tpu.memory_space<vmem>>, vector<16x1xi32>
      %28 = tpu.iota {dimensions = array<i32: 1>} : vector<16x32xi32>
      %29 = vector.broadcast %27 : vector<16x1xi32> to vector<16x32xi32>
      %30 = arith.cmpi eq, %28, %29 : vector<16x32xi32>
      %cst_11 = arith.constant 0.000000e+00 : f32
      %31 = vector.broadcast %cst_11 : f32 to vector<16x32xf32>
      %32 = arith.select %30, %12, %31 : vector<16x32xi1>, vector<16x32xf32>
      %cst_12 = arith.constant dense<0.000000e+00> : vector<16xf32>
      %33 = vector.multi_reduction <add>, %32, %cst_12 [1] : vector<16x32xf32> to vector<16xf32>
      %34 = vector.shape_cast %33 : vector<16xf32> to vector<16x1xf32>
      %35 = arith.subf %21, %34 : vector<16x1xf32>
      %c0_i32_13 = arith.constant 0 : i32
      %36 = vector.broadcast %c0_i32_13 : i32 to vector<16x1xi32>
      %37 = arith.cmpi ne, %27, %36 : vector<16x1xi32>
      %c0_14 = arith.constant 0 : index
      %c0_15 = arith.constant 0 : index
      %38 = vector.load %arg5[%c0_14, %c0_15] : memref<16x1xf32, #tpu.memory_space<vmem>>, vector<16x1xf32>
      %39 = arith.addf %38, %26 : vector<16x1xf32>
      %c0_16 = arith.constant 0 : index
      %c0_17 = arith.constant 0 : index
      %40 = vector.load %arg5[%c0_16, %c0_17] : memref<16x1xf32, #tpu.memory_space<vmem>>, vector<16x1xf32>
      tpu.vector_store %arg5[%c0_16, %c0_17], %39 {strides = array<i32>} : memref<16x1xf32, #tpu.memory_space<vmem>>, vector<16x1xf32>,
      %c0_18 = arith.constant 0 : index
      %c0_19 = arith.constant 0 : index
      %41 = vector.load %arg6[%c0_18, %c0_19] : memref<16x1xf32, #tpu.memory_space<vmem>>, vector<16x1xf32>
      %cst_20 = arith.constant 0.000000e+00 : f32
      %42 = vector.broadcast %cst_20 : f32 to vector<16x1xf32>
      %43 = arith.select %37, %35, %42 : vector<16x1xi1>, vector<16x1xf32>
      %44 = arith.addf %41, %43 : vector<16x1xf32>
      %c0_21 = arith.constant 0 : index
      %c0_22 = arith.constant 0 : index
      %45 = vector.load %arg6[%c0_21, %c0_22] : memref<16x1xf32, #tpu.memory_space<vmem>>, vector<16x1xf32>
      tpu.vector_store %arg6[%c0_21, %c0_22], %44 {strides = array<i32>} : memref<16x1xf32, #tpu.memory_space<vmem>>, vector<16x1xf32>,
      %c0_23 = arith.constant 0 : index
      %c0_24 = arith.constant 0 : index
      %46 = vector.load %arg7[%c0_23, %c0_24] : memref<16x1xf32, #tpu.memory_space<vmem>>, vector<16x1xf32>
      %47 = arith.extui %37 : vector<16x1xi1> to vector<16x1xi32>
      %48 = arith.sitofp %47 : vector<16x1xi32> to vector<16x1xf32>
      %49 = arith.addf %46, %48 : vector<16x1xf32>
      %c0_25 = arith.constant 0 : index
      %c0_26 = arith.constant 0 : index
      %50 = vector.load %arg7[%c0_25, %c0_26] : memref<16x1xf32, #tpu.memory_space<vmem>>, vector<16x1xf32>
      tpu.vector_store %arg7[%c0_25, %c0_26], %49 {strides = array<i32>} : memref<16x1xf32, #tpu.memory_space<vmem>>, vector<16x1xf32>,
    } else {
    }
    %c0_i32_3 = arith.constant 0 : i32
    %9 = arith.cmpi eq, %arg1, %c0_i32_3 : i32
    %10 = arith.extui %9 : i1 to i32
    %c0_i32_4 = arith.constant 0 : i32
    %11 = arith.cmpi ne, %10, %c0_i32_4 : i32
    scf.if %11 {
      %c0 = arith.constant 0 : index
      %c0_5 = arith.constant 0 : index
      %12 = vector.load %arg5[%c0, %c0_5] : memref<16x1xf32, #tpu.memory_space<vmem>>, vector<16x1xf32>
      %13 = vector.shape_cast %12 : vector<16x1xf32> to vector<1x16x1xf32>
      %cst = arith.constant dense<0.000000e+00> : vector<1xf32>
      %14 = vector.multi_reduction <add>, %13, %cst [1, 2] : vector<1x16x1xf32> to vector<1xf32>
      %15 = vector.shape_cast %14 : vector<1xf32> to vector<1x1x1xf32>
      %16 = vector.extract %15[0, 0, 0] : f32 from vector<1x1x1xf32>
      %c0_6 = arith.constant 0 : index
      %c0_7 = arith.constant 0 : index
      %17 = vector.load %arg6[%c0_6, %c0_7] : memref<16x1xf32, #tpu.memory_space<vmem>>, vector<16x1xf32>
      %18 = vector.shape_cast %17 : vector<16x1xf32> to vector<1x16x1xf32>
      %cst_8 = arith.constant dense<0.000000e+00> : vector<1xf32>
      %19 = vector.multi_reduction <add>, %18, %cst_8 [1, 2] : vector<1x16x1xf32> to vector<1xf32>
      %20 = vector.shape_cast %19 : vector<1xf32> to vector<1x1x1xf32>
      %21 = vector.extract %20[0, 0, 0] : f32 from vector<1x1x1xf32>
      %c0_9 = arith.constant 0 : index
      %c0_10 = arith.constant 0 : index
      %22 = vector.load %arg7[%c0_9, %c0_10] : memref<16x1xf32, #tpu.memory_space<vmem>>, vector<16x1xf32>
      %23 = vector.shape_cast %22 : vector<16x1xf32> to vector<1x16x1xf32>
      %cst_11 = arith.constant dense<0.000000e+00> : vector<1xf32>
      %24 = vector.multi_reduction <add>, %23, %cst_11 [1, 2] : vector<1x16x1xf32> to vector<1xf32>
      %25 = vector.shape_cast %24 : vector<1xf32> to vector<1x1x1xf32>
      %26 = vector.extract %25[0, 0, 0] : f32 from vector<1x1x1xf32>
      %27 = tpu.iota {dimensions = array<i32: 0>} : vector<8x128xi32>
      %c0_i32_12 = arith.constant 0 : i32
      %28 = vector.broadcast %c0_i32_12 : i32 to vector<8x128xi32>
      %29 = arith.cmpi eq, %27, %28 : vector<8x128xi32>
      %c1_i32_13 = arith.constant 1 : i32
      %30 = vector.broadcast %c1_i32_13 : i32 to vector<8x128xi32>
      %31 = arith.cmpi eq, %27, %30 : vector<8x128xi32>
      %c2_i32 = arith.constant 2 : i32
      %32 = vector.broadcast %c2_i32 : i32 to vector<8x128xi32>
      %33 = arith.cmpi eq, %27, %32 : vector<8x128xi32>
      %cst_14 = arith.constant 0.000000e+00 : f32
      %34 = vector.broadcast %26 : f32 to vector<8x128xf32>
      %35 = vector.broadcast %cst_14 : f32 to vector<8x128xf32>
      %36 = arith.select %33, %34, %35 : vector<8x128xi1>, vector<8x128xf32>
      %37 = vector.broadcast %21 : f32 to vector<8x128xf32>
      %38 = arith.select %31, %37, %36 : vector<8x128xi1>, vector<8x128xf32>
      %39 = vector.broadcast %16 : f32 to vector<8x128xf32>
      %40 = arith.select %29, %39, %38 : vector<8x128xi1>, vector<8x128xf32>
      %41 = vector.shape_cast %40 : vector<8x128xf32> to vector<1x8x128xf32>
      %c0_15 = arith.constant 0 : index
      %c0_16 = arith.constant 0 : index
      %c0_17 = arith.constant 0 : index
      %42 = vector.load %arg4[%c0_15, %c0_16, %c0_17] : memref<1x8x128xf32, #tpu.memory_space<vmem>>, vector<1x8x128xf32>
      tpu.vector_store %arg4[%c0_15, %c0_16, %c0_17], %41 {strides = array<i32>} : memref<1x8x128xf32, #tpu.memory_space<vmem>>, vector<1x8x128xf32>,
    } else {
    }
    return
  }
  func.func @transform_0(%arg0: i32, %arg1: i32) -> (i32, i32) {
    %c1_i32 = arith.constant 1 : i32
    %0 = arith.muli %arg0, %c1_i32 : i32
    %1 = arith.addi %0, %arg1 : i32
    %c0_i32 = arith.constant 0 : i32
    %2 = arith.minsi %1, %c0_i32 : i32
    %c0_i32_0 = arith.constant 0 : i32
    %c0_i32_1 = arith.constant 0 : i32
    return %2, %c0_i32_0 : i32, i32
  }
  func.func @transform_1(%arg0: i32, %arg1: i32) -> (i32, i32) {
    %c1_i32 = arith.constant 1 : i32
    %0 = arith.muli %arg0, %c1_i32 : i32
    %1 = arith.addi %0, %arg1 : i32
    %c0_i32 = arith.constant 0 : i32
    %2 = arith.minsi %1, %c0_i32 : i32
    %c0_i32_0 = arith.constant 0 : i32
    %c0_i32_1 = arith.constant 0 : i32
    return %2, %c0_i32_0 : i32, i32
  }
  func.func @transform_2(%arg0: i32, %arg1: i32) -> (i32, i32, i32) {
    %c0_i32 = arith.constant 0 : i32
    %c0_i32_0 = arith.constant 0 : i32
    %c0_i32_1 = arith.constant 0 : i32
    return %arg0, %c0_i32, %c0_i32_0 : i32, i32, i32
  }
}

</mosaic_0001>

<bundles_post_ra>
// kernel: tpu_custom_call.1
= control target key start
LH: loop header
LB: loop body
LE: loop exit
PB: predicated region body
PF: predicated region fallthrough
CT: control target
= control target key end

     0   :  { %7 = vsyncpa [#allocation6], 0  ;;  %s834_s0 = inlined_call_operand.vmem [shape: f32[16,32], index: 0, kind: input, shape index: {}]   ;;  %s835_s1 = inlined_call_operand.vmem [shape: s32[16,1], index: 1, kind: input, shape index: {}]   ;;  %s836_s2 = inlined_call_operand.hbm [shape: f32[2,8,128], index: 2, kind: output, shape index: {}]  }
   0x1   :  { %9 = vsyncpa [#allocation6 + $0x1], 0  ;;  %s665_s9 = smov 0   ;;  %s667_s10 = smov 0  }
   0x2   :  { %s669_s11 = smov 0   ;;  %s671_s12 = smov 0  }
   0x3   :  { %s673_s13 = smov 0   ;;  %s675_s14 = smov 0  }
   0x4 LB: > { %s474_s15 = sadd.s32 4294967295, %s644_s14   ;;  %s475_s16 = sadd.s32 4294967294, %s644_s14   ;;  %s644_s14 = sphi %s675_s14, %s15_s14   ;;  %s640_s13 = sphi %s673_s13, %s843_s13   ;;  %s636_s12 = sphi %s671_s12, %s842_s12   ;;  %s632_s11 = sphi %s669_s11, %s841_s11   ;;  %s628_s10 = sphi %s667_s10, %s840_s10   ;;  %s624_s9 = sphi %s665_s9, %s839_s9  }
   0x5   : > { %s27_s17 = sadd.s32 1, %s640_s13  ;;  %s98_s18 = sadd.s32 1, %s632_s11 }
   0x6   : > { %p29_p0 = scmp.ge.s32.totalorder %s27_s17, 2  ;;  %p108_p1 = scmp.ne.s32.totalorder %s632_s11, %s628_s10 }
   0x7   : > { %p109_p2 = scmp.eq.s32.totalorder %s474_s15, 1  ;;  %p114_p3 = scmp.ne.s32.totalorder %s628_s10, %s624_s9 }
   0x8   : > { %s845_s17 = smov (%p29_p0, %s27_s17), 0  ;;  %p115_p5 = scmp.eq.s32.totalorder %s475_s16, 1 }
   0x9   : > { %p705_p4 = por %p109_p2, %p108_p1  ;;  %s95_s20 = ssub.s32 %s640_s13, %s845_s17 }
   0xa   : > { %p478_p6 = scmp.ge.s32.totalorder %s644_s14, 1  ;;  %p96_p7 = scmp.eq.s32.totalorder %s95_s20, 0 }
   0xb   : > { %p712_p8 = por %p115_p5, %p114_p3  ;;  %p163_p9 = scmp.lt.s32.totalorder %s644_s14, 3 }
   0xc   : > { %s718_s22 = scalar_select %p96_p7, %s632_s11, %s98_s18  }
   0xd   : > { %p164_p10 = pnand %p478_p6, %p163_p9 }
   0xe   : > { %s193_s23 = sand.u32 (!%p164_p10), 1, %s628_s10   ;;  %p197_p11 = scmp.lt.s32.totalorder (!%p164_p10), %s636_s12, 0  ;;  %vm224_vm0 = vcmask (!%p164_p10), 7168   ;;  %v646_v0 = vmov (!%p164_p10), 0.0  }
   0xf   : > { %167 = sbr.rel (%p164_p10) target bundleno = 595 (0x253), region = 28  ;;  %s724_s24 = sshll.u32 (!%p164_p10), %s193_s23, 3  ;;  %225 = vst.msk [vmem:[#allocation2] sm:$0xff] (!%p164_p10), %vm224_vm0, %v646_v0  ;;  %226 = vst.msk [vmem:[#allocation2 + $0x8] sm:$0xff] (!%p164_p10), %vm224_vm0, %v646_v0 }
  0x10   : > { %227 = vst.msk [vmem:[#allocation3] sm:$0xff] (!%p164_p10), %vm224_vm0, %v646_v0  ;;  %228 = vst.msk [vmem:[#allocation3 + $0x8] sm:$0xff] (!%p164_p10), %vm224_vm0, %v646_v0  ;;  %s484_s25 = sshll.u32 (!%p164_p10), %s636_s12, 4  ;;  %s195_s7 = scalar_lea.vmem (!%p164_p10), [#allocation5], %s724_s24 }
  0x11   : > { %229 = vst.msk [vmem:[#allocation4] sm:$0xff] (!%p164_p10), %vm224_vm0, %v646_v0  ;;  %230 = vst.msk [vmem:[#allocation4 + $0x8] sm:$0xff] (!%p164_p10), %vm224_vm0, %v646_v0  ;;  %p485_p13 = scmp.ge.s32.totalorder (!%p164_p10), %s484_s25, 16 }
  0x16   : > { %s198_s26 = scalar_select %p197_p11, %s636_s12, 0 }
  0x17   : > { %236 = sbr.rel (%p485_p13) target bundleno = 358 (0x166), region = 36  ;;  %vm239_vm1 = vcmask (!%p485_p13), 261120   ;;  %v647_v5 = vmov (!%p485_p13), 0   ;;  %v648_v9 = vmov (!%p485_p13), 0.0   ;;  %v276_v19 = vlaneseq (!%p485_p13)  ;;  %v305_v45 = vld [vmem:[#allocation3] sm:$0xff] (!%p485_p13)  ;;  %v298_v48 = vld [vmem:[#allocation2] sm:$0xff] (!%p485_p13) }
  0x18   : > { %s480_s27 = sshll.u32 %s198_s26, 1  ;;  %556 = vset.pattern.permute.xlu1 (!%p485_p13), %v647_v5  ;;  %v313_v6 = vld [vmem:[#allocation4] sm:$0xff] (!%p485_p13)  ;;  %v314_v8 = vld [vmem:[#allocation4 + $0x8] sm:$0xff] (!%p485_p13)  ;;  %557 = vset.pattern.permute.xlu0 (!%p485_p13), %v647_v5  ;;  %v306_v54 = vld [vmem:[#allocation3 + $0x8] sm:$0xff] (!%p485_p13) }
  0x19   : > { %p200_p12 = scmp.lt.s32.totalorder %s480_s27, 1  ;;  %v277_v23 = vand.u32 (!%p485_p13), 127, %v276_v19  ;;  %v299_v58 = vld [vmem:[#allocation2 + $0x8] sm:$0xff] (!%p485_p13) }
  0x1b   : > { %s847_s27 = smov (!%p200_p12, %s480_s27), 1 }
  0x1c   : > { %s481_s28 = sshll.u32 %s847_s27, 3 }
  0x1d   : > { %s203_s3 = scalar_lea.vmem %s834_s0, %s481_s28  ;;  %s215_s6 = scalar_lea.vmem %s835_s1, %s481_s28 }
  0x1e   : > { %v237_v1 = vld [vmem:[%s203_s3] sm:$0xff]  ;;  %v238_v2 = vld [vmem:[%s203_s3 + $0x8] sm:$0xff] }
  0x1f   : > { %v741_v3 = vld [vmem:[%s215_s6] sm:$0xff]  ;;  %v240_v4 = vsel %vm239_vm1, %v237_v1, -inf  ;;  %v745_v7 = vld [vmem:[%s215_s6 + $0x8] sm:$0xff]  ;;  %v243_v11 = vsel %vm239_vm1, %v238_v2, -inf  ;;  %v264_v33 = vsel %vm239_vm1, %v237_v1, 0.0  ;;  %v267_v34 = vsel %vm239_vm1, %v238_v2, 0.0 }
  0x20   : > { %vm296_vm2 = vcmp.ne.s32.totalorder %v741_v3, 0  ;;  %241 = vmax.xlane.f32.xlu0 %v240_v4  ;;  %279 = vperm.xlu1 %556, %v741_v3   ;;  %vm297_vm3 = vcmp.ne.s32.totalorder %v745_v7, 0 }
  0x21   : > { %v486_v10 = vsel %vm296_vm2, 1.0, %v648_v9  ;;  %v487_v13 = vsel %vm297_vm3, 1.0, %v648_v9 }
  0x22   : > { %v319_v12 = vadd.f32 %v486_v10, %v313_v6  ;;  %v320_v14 = vadd.f32 %v487_v13, %v314_v8 }
  0x24   : > { %321 = vst.msk [vmem:[#allocation4] sm:$0xff] %vm224_vm0, %v319_v12  ;;  %244 = vmax.xlane.f32.xlu0 %v243_v11  ;;  %322 = vst.msk [vmem:[#allocation4 + $0x8] sm:$0xff] %vm224_vm0, %v320_v14  ;;  %282 = vperm.xlu1 %556, %v745_v7  }
  0x9f   : > { %v280_v22 = vpop.permute.xlu1 %279 }
  0xa0   : > { %vm284_vm4 = vcmp.eq.s32.totalorder %v277_v23, %v280_v22 }
  0xa1   : > { %v286_v26 = vsel %vm284_vm4, %v237_v1, 0.0 }
  0xa2   : > { %v288_v28 = vsel %vm239_vm1, %v286_v26, 0.0 }
  0xa3   : > { %v283_v24 = vpop.permute.xlu1 %282 }
  0xa4   : > { %vm285_vm5 = vcmp.eq.s32.totalorder %v277_v23, %v283_v24 }
  0xa5   : > { %v287_v30 = vsel %vm285_vm5, %v238_v2, 0.0 }
  0xa6   : > { %v291_v32 = vsel %vm239_vm1, %v287_v30, 0.0 }
  0xad   : > { %v242_v15 = vpop.xlane.xlu0 %241 }
  0xae   : > { %v246_v16 = vsub.f32 %v237_v1, %v242_v15 }
  0xb0   : > { %v248_v17 = vmul.f32 1.442695, %v246_v16 }
  0xb1   : > { %v245_v18 = vpop.xlane.xlu0 %244 }
  0xb2   : > { %558 = vpow2.f32 %v248_v17  ;;  %v247_v20 = vsub.f32 %v238_v2, %v245_v18 }
  0xb4   : > { %v250_v21 = vmul.f32 1.442695, %v247_v20 }
  0xb6   : > { %560 = vpow2.f32 %v250_v21 }
  0xbc   : > { %v559_v25 = vpop.eup %558 }
  0xbd   : > { %v252_v27 = vsel %vm239_vm1, %v559_v25, 0.0 }
  0xbe   : > { %253 = vadd.xlane.f32.xlu0 %v252_v27 }
  0xc0   : > { %v561_v29 = vpop.eup %560 }
  0xc1   : > { %v255_v31 = vsel %vm239_vm1, %v561_v29, 0.0 }
  0xc2   : > { %256 = vadd.xlane.f32.xlu1 %v255_v31  ;;  %289 = vadd.xlane.f32.xlu0 %v288_v28 }
  0xc6   : > { %292 = vadd.xlane.f32.xlu0 %v291_v32 }
  0xca   : > { %265 = vadd.xlane.f32.xlu0 %v264_v33 }
  0xce   : > { %268 = vadd.xlane.f32.xlu0 %v267_v34 }
 0x14b   : > { %v254_v35 = vpop.xlane.xlu0 %253 }
 0x14c   : > { %562 = vlog2.f32 %v254_v35 }
 0x14f   : > { %v257_v36 = vpop.xlane.xlu1 %256  ;;  %v290_v37 = vpop.xlane.xlu0 %289 }
 0x150   : > { %564 = vlog2.f32 %v257_v36 }
 0x153   : > { %v293_v38 = vpop.xlane.xlu0 %292 }
 0x156   : > { %v563_v39 = vpop.eup %562 }
 0x157   : > { %v259_v40 = vmul.f32 0.6931472, %v563_v39  ;;  %v266_v41 = vpop.xlane.xlu0 %265 }
 0x159   : > { %v262_v42 = vadd.f32 %v259_v40, %v242_v15 }
 0x15a   : > { %v565_v43 = vpop.eup %564 }
 0x15b   : > { %v261_v44 = vmul.f32 0.6931472, %v565_v43  ;;  %v294_v46 = vsub.f32 %v262_v42, %v290_v37  ;;  %v270_v47 = vmul.f32 32.0, %v262_v42  ;;  %v269_v53 = vpop.xlane.xlu0 %268 }
 0x15d   : > { %v307_v49 = vsel %vm296_vm2, %v294_v46, 0.0  ;;  %v263_v50 = vadd.f32 %v261_v44, %v245_v18  ;;  %v272_v51 = vsub.f32 %v270_v47, %v266_v41 }
 0x15e   : > { %v309_v52 = vadd.f32 %v307_v49, %v305_v45 }
 0x15f   : > { %v295_v55 = vsub.f32 %v263_v50, %v293_v38  ;;  %v300_v56 = vadd.f32 %v298_v48, %v272_v51  ;;  %v271_v57 = vmul.f32 32.0, %v263_v50 }
 0x160   : > { %311 = vst.msk [vmem:[#allocation3] sm:$0xff] %vm224_vm0, %v309_v52 }
 0x161   : > { %v308_v59 = vsel %vm297_vm3, %v295_v55, 0.0  ;;  %303 = vst.msk [vmem:[#allocation2] sm:$0xff] %vm224_vm0, %v300_v56  ;;  %v273_v60 = vsub.f32 %v271_v57, %v269_v53 }
 0x162   : > { %v310_v61 = vadd.f32 %v308_v59, %v306_v54 }
 0x163   : > { %v301_v62 = vadd.f32 %v299_v58, %v273_v60 }
 0x164   : > { %312 = vst.msk [vmem:[#allocation3 + $0x8] sm:$0xff] %vm224_vm0, %v310_v61 }
 0x165   : > { %304 = vst.msk [vmem:[#allocation2 + $0x8] sm:$0xff] %vm224_vm0, %v301_v62 }
 0x166 PF: > { %v355_v63 = vld [vmem:[#allocation4] sm:$0xff]  ;;  %v356_v0 = vld [vmem:[#allocation4 + $0x8] sm:$0xff]  ;;  %v369_v35 = vlaneseq  ;;  %s489_s16 = sshll.u32 %s636_s12, 7  ;;  %s395_s20 = sshll.u32 %s195_s7, 4  ;;  %s785_s20 = int_to_ptr.vmem [resolvable:$true] %s395_s20 }
 0x167   : > { %v357_v2 = vsel %vm224_vm0, %v355_v63, 0.0  ;;  %v358_v3 = vsel %vm224_vm0, %v356_v0, 0.0  ;;  %v341_v6 = vld [vmem:[#allocation3] sm:$0xff]  ;;  %s783_s27 = scalar_lea.hbm %s836_s2, %s489_s16  ;;  %s382_s12 = scalar_lea.sflag [#allocation6], %s193_s23 }
 0x168   : > { %v326_v1 = vld [vmem:[#allocation2] sm:$0xff]  ;;  %v359_v8 = vadd.f32 %v358_v3, %v357_v2  ;;  %v343_v10 = vsel %vm224_vm0, %v341_v6, 0.0  ;;  %v370_v36 = vshrl.u32 %v369_v35, 7  ;;  %s566_s28 = scalar_lea.vmem %s785_s20, 128  ;;  %s649_s29 = smov [#allocation5]  }
 0x169   : > { %v329_v5 = vsel %vm224_vm0, %v326_v1, 0.0  ;;  %p567_p0 = scmp.ne.s32.totalorder %s785_s20, %s566_s28  ;;  %s570_s30 = sshll.u32 %s649_s29, 4  ;;  %s571_s30 = int_to_ptr.vmem [resolvable:$false] %s570_s30 }
 0x16a   : > { %360 = vadd.xlane.f32.xlu1 %v359_v8  ;;  %vm373_vm6 = vcmp.eq.s32.totalorder %v370_v36, 2  ;;  %vm372_vm7 = vcmp.eq.s32.totalorder %v370_v36, 1  ;;  %vm371_vm8 = vcmp.eq.s32.totalorder %v370_v36, 0  ;;  %s572_s3 = scalar_lea.vmem %s571_s30, 256  ;;  %p573_p3 = scmp.lt.s32.totalorder %s785_s20, %s571_s30 }
 0x16b   : > { %v342_v7 = vld [vmem:[#allocation3 + $0x8] sm:$0xff]  ;;  %p568_p1 = pnand %p567_p0, %p705_p4  ;;  %p574_p5 = scmp.lt.s32.totalorder %s572_s3, %s566_s28 }
 0x16c   : > { %v327_v4 = vld [vmem:[#allocation2 + $0x8] sm:$0xff]  ;;  %v344_v11 = vsel %vm224_vm0, %v342_v7, 0.0 }
 0x16d   : > { %v330_v9 = vsel %vm224_vm0, %v327_v4, 0.0  ;;  %v345_v13 = vadd.f32 %v344_v11, %v343_v10  ;;  %p569_p2 = pneg %p568_p1  ;;  %p575_p6 = por %p574_p5, %p573_p3 }
 0x16e   : > { %v331_v12 = vadd.f32 %v330_v9, %v329_v5 }
 0x16f   : > { %p576_p7 = pnand %p575_p6, %p569_p2 }
 0x170   : > { %332 = vadd.xlane.f32.xlu0 %v331_v12 }
 0x174   : > { %346 = vadd.xlane.f32.xlu0 %v345_v13 }
 0x1f7   : > { %v361_v14 = vpop.xlane.xlu1 %360 }
 0x1f8   : > { %v362_v15 = vrot.slane %v361_v14, 4 }
 0x1fa   : > { %v363_v18 = vadd.f32 %v362_v15, %v361_v14 }
 0x1fc   : > { %v364_v20 = vrot.slane %v363_v18, 2 }
 0x1fd   : > { %v333_v16 = vpop.xlane.xlu0 %332 }
 0x1fe   : > { %v334_v17 = vrot.slane %v333_v16, 4  ;;  %v365_v26 = vadd.f32 %v364_v20, %v363_v18 }
 0x200   : > { %v335_v19 = vadd.f32 %v334_v17, %v333_v16  ;;  %v366_v31 = vrot.slane %v365_v26, 1 }
 0x201   : > { %v347_v21 = vpop.xlane.xlu0 %346 }
 0x202   : > { %v336_v22 = vrot.slane %v335_v19, 2  ;;  %v348_v23 = vrot.slane %v347_v21, 4  ;;  %v367_v34 = vadd.f32 %v366_v31, %v365_v26 }
 0x204   : > { %v349_v24 = vadd.f32 %v348_v23, %v347_v21  ;;  %v337_v25 = vadd.f32 %v336_v22, %v335_v19 }
 0x206   : > { %v350_v27 = vrot.slane %v349_v24, 2  ;;  %v338_v28 = vrot.slane %v337_v25, 1 }
 0x208   : > { %v351_v29 = vadd.f32 %v350_v27, %v349_v24  ;;  %v339_v30 = vadd.f32 %v338_v28, %v337_v25 }
 0x20a   : > { %492 = vpush %v339_v30  ;;  %v352_v32 = vrot.slane %v351_v29, 1 }
 0x20c   : > { %v353_v33 = vadd.f32 %v352_v32, %v351_v29 }
 0x20e   : > { %494 = vpush %v353_v33 }
 0x20f   : > { %496 = vpush %v367_v34 }
 0x23b   : > { %s493_s8 = spop %492 }
 0x23c   : > { %v378_v40 = vstv %s493_s8 }
 0x23f   : > { %s495_s15 = spop %494 }
 0x240   : > { %v376_v37 = vstv %s495_s15  ;;  %s497_s18 = spop %496 }
 0x241   : > { %v374_v38 = vstv %s497_s18 }
 0x242   : > { %v375_v39 = vsel %vm373_vm6, %v374_v38, 0.0 }
 0x243   : > { %v377_v41 = vsel %vm372_vm7, %v376_v37, %v375_v39 }
 0x244   : > { %v379_v42 = vsel %vm371_vm8, %v378_v40, %v377_v41 }
 0x245   : > { %380 = vst [vmem:[%s195_s7] sm:$0xff] %v379_v42 }
 0x246   : > { %579 = shalt.err (!%p576_p7)
}
 0x247   : > { %s580_s23 = scalar_lea.hbm %s783_s27, 128  ;;  %s584_s5 = scalar_lea.hbm %s836_s2, 256 }
 0x248   : > { %p581_p9 = scmp.ne.s32.totalorder %s783_s27, %s580_s23  ;;  %p585_p12 = scmp.lt.u32.totalorder %s783_s27, %s836_s2 }
 0x249   : > { %p586_p13 = scmp.lt.u32.totalorder %s584_s5, %s580_s23  ;;  %p588_p1 = scmp.lt.u32.totalorder %s580_s23, %s783_s27 }
 0x24a   : > { %p582_p10 = pnand %p581_p9, %p705_p4 }
 0x24b   : > { %p587_p0 = por %p586_p13, %p585_p12 }
 0x24c   : > { %p583_p11 = pneg %p582_p10 }
 0x24d   : > { %p589_p2 = por %p588_p1, %p587_p0 }
 0x24f   : > { %p590_p3 = pnand %p589_p2, %p583_p11 }
 0x251   : > { %593 = shalt.err (!%p590_p3)
}
 0x252   : > { %498 = dma.vmem_to_hbm [thread:$0]  (%p705_p4), %s785_s20, 128, %s783_s27, %s382_s12  }
 0x253 PF: > { %p504_p5 = scmp.ge.s32.totalorder %s644_s14, 2  ;;  %s407_s8 = sand.u32 1, %s624_s9  }
 0x254   : > { %s408_s15 = scalar_lea.sflag [#allocation6], %s407_s8 }
 0x255   : > { %p501_p6 = pnand %p504_p5, %p712_p8 }
 0x257   : > { %619 = dma.done.wait (!%p501_p6), %s408_s15, 128  }
 0x258   : > { %621 = vsyncadd (!%p501_p6), %s408_s15, 4294967168  ;;  %s15_s14 = sadd.s32 1, %s644_s14   ;;  %s839_s9 = smov %s628_s10 }
 0x259   : > { %p12_p7 = scmp.ge.s32.totalorder %s15_s14, 4   ;;  %s840_s10 = smov %s632_s11 }
 0x25a   : > { %s841_s11 = smov %s718_s22  ;;  %s842_s12 = smov %s640_s13 }
 0x25b   : > { %s843_s13 = smov %s845_s17  ;;  %14 = sbr.rel (!%p12_p7) target bundleno = 4 (0x4), region = 78 }
 0x262   :  { %413 = vsyncpa [#allocation6], 1 }
 0x263   :  { %415 = vsyncpa [#allocation6 + $0x1], 1 }

</bundles_post_ra>
